<compile_context>
chip_gen: v5e
topology: v5e:2x2
jax: 0.10.0
libtpu: 0.0.40
codegen_flags: <defaults>
</compile_context>

<pallas_src>
import numpy as np
import jax
import jax.numpy as jnp
from jax.experimental import pallas as pl
from jax.experimental.pallas import tpu as pltpu


def _round_up(x, m):
    return ((x + m - 1) // m) * m


# ----------------------------- Pallas kernel ------------------------------- #

def _mesh_conv_kernel(f_ref, w0_ref, wr_ref, b_ref, o_ref, g_ref):
    # f_ref : (1, 5, Cp, TE)  gathered ring features (compute dtype)
    # w0_ref: (Cout, Cp)      tap-0 weights
    # wr_ref: (Cout, 4*Cp)    taps 1..4 weights, block order [g1|g2|g3|g4]
    # b_ref : (Cout, 1)       f32 bias
    # o_ref : (1, Cout, TE)   f32 output
    # g_ref : (4*Cp, TE)      persistent VMEM scratch (compute dtype)
    cp = f_ref.shape[2]

    # symmetric (order-invariant) functions over the 4 ring neighbors,
    # computed E-major so every VPU op runs on full 128-lane vregs.
    f1 = f_ref[0, 1]
    f3 = f_ref[0, 3]
    g_ref[pl.ds(0 * cp, cp), :] = f1 + f3              # g1
    g_ref[pl.ds(2 * cp, cp), :] = jnp.abs(f1 - f3)     # g3
    f2 = f_ref[0, 2]
    f4 = f_ref[0, 4]
    g_ref[pl.ds(1 * cp, cp), :] = f2 + f4              # g2
    g_ref[pl.ds(3 * cp, cp), :] = jnp.abs(f2 - f4)     # g4

    # split MXU contraction: g0 straight from f_ref (no copy), rest from scratch
    acc = jnp.dot(w0_ref[...], f_ref[0, 0], preferred_element_type=jnp.float32)
    acc = acc + jnp.dot(wr_ref[...], g_ref[...], preferred_element_type=jnp.float32)
    o_ref[0] = (acc + b_ref[...]).astype(o_ref.dtype)


def mesh_conv_pallas(f, w0, wr, b2, te, *, vmem_limit_bytes=40 * 1024 * 1024):
    """f : (B, 5, Cp, E_pad) compute-dtype gathered ring features (E_pad % te == 0)
    w0 : (Cout, Cp), wr: (Cout, 4*Cp), b2: (Cout, 1) f32  ->  (B, Cout, E_pad) f32."""
    B, K, Cp, Ep = f.shape
    Cout = w0.shape[0]
    assert K == 5 and Ep % te == 0 and te % 128 == 0
    return pl.pallas_call(
        _mesh_conv_kernel,
        out_shape=jax.ShapeDtypeStruct((B, Cout, Ep), jnp.float32),
        grid_spec=pltpu.PrefetchScalarGridSpec(
            num_scalar_prefetch=0,
            grid=(B, Ep // te),
            in_specs=[
                pl.BlockSpec((1, K, Cp, te), lambda b, e: (b, 0, 0, e)),
                pl.BlockSpec((Cout, Cp), lambda b, e: (0, 0)),
                pl.BlockSpec((Cout, (K - 1) * Cp), lambda b, e: (0, 0)),
                pl.BlockSpec((Cout, 1), lambda b, e: (0, 0)),
            ],
            out_specs=pl.BlockSpec((1, Cout, te), lambda b, e: (b, 0, e)),
            scratch_shapes=[pltpu.VMEM(((K - 1) * Cp, te), f.dtype)],
        ),
        compiler_params=pltpu.CompilerParams(
            dimension_semantics=("parallel", "parallel"),
            vmem_limit_bytes=vmem_limit_bytes),
    )(f, w0, wr, b2)


# ------------------------------ module glue -------------------------------- #

class Mesh:
    """Minimal stand-in for the MeshCNN mesh data structure."""

    def __init__(self, gemm_edges, edges_count):
        self.gemm_edges = gemm_edges            # (edges_count, 4) int
        self.edges_count = int(edges_count)
        self.x = None


class MeshConvPallas:
    # VMEM budget for per-tile kernel buffers (safe on v5e/v6e/v7x); the scoped
    # limit we request from Mosaic is a bit larger to leave compiler headroom.
    _VMEM_BUDGET = 28 * 1024 * 1024
    _VMEM_LIMIT = 40 * 1024 * 1024

    def __init__(self, in_channels, out_channels, k=5, bias=True, key=None,
                 compute_dtype=jnp.bfloat16):
        assert k == 5, "MeshConv symmetric functions assume k == 5"
        key = jax.random.PRNGKey(0) if key is None else key
        kw, kb = jax.random.split(key)
        bound = 1.0 / np.sqrt(in_channels * k)   # PyTorch Conv2d default init
        # nn.Conv2d(in, out, kernel_size=(1, k)) weight: (out, in, 1, k)
        self.weight = jax.random.uniform(
            kw, (out_channels, in_channels, 1, k), jnp.float32, -bound, bound)
        self.bias = (jax.random.uniform(kb, (out_channels,), jnp.float32,
                                        -bound, bound)
                     if bias else jnp.zeros((out_channels,), jnp.float32))
        self.k = k
        self.in_channels = in_channels
        self.out_channels = out_channels
        self.compute_dtype = compute_dtype

    # -------------------------- index / gather glue ------------------------ #

    def pad_gemm(self, m, xsz):
        g = jnp.asarray(np.asarray(m.gemm_edges), jnp.int32)       # (ne, 4)
        ids = jnp.arange(m.edges_count, dtype=jnp.int32)[:, None]  # (ne, 1)
        g = jnp.concatenate([ids, g], axis=1)                      # (ne, 5)
        pad = jnp.full((xsz - m.edges_count, 5), -1, jnp.int32)
        return jnp.concatenate([g, pad], axis=0)[None]             # (1, xsz, 5)

    def gather_ring(self, x, meshes, e_pad):
        """x: (B, C, E) -> f: (B, 5, C, e_pad) gathered ring features, E-major."""
        B, C, E = x.shape
        G = jnp.concatenate([self.pad_gemm(m, E) for m in meshes], 0)   # (B,E,5)
        # prepend a zero feature column; index -1 -> 0 points at it
        xp = jnp.concatenate([jnp.zeros((B, C, 1), x.dtype), x], axis=2)
        # Permute the tiny int32 index table (not the big feature tensor) so the
        # gather emits f directly in the kernel's (B, 5, C, E) layout -> one HBM
        # write of the 5x-duplicated tensor instead of gather + transpose.
        idx = jnp.transpose(G + 1, (0, 2, 1))                           # (B,5,E)
        f = jnp.take_along_axis(xp[:, None, :, :], idx[:, :, None, :], axis=3)
        if e_pad > E:
            f = jnp.pad(f, ((0, 0), (0, 0), (0, 0), (0, e_pad - E)))
        return f                                                        # (B,5,C,e_pad)

    # ------------------------------ tiling --------------------------------- #

    def _pick_te(self, c_pad, E, B, in_bytes):
        e128 = _round_up(E, 128)
        te = min(2048, e128)

        def vmem_use(t):
            return (2 * 5 * c_pad * t * in_bytes          # double-buffered f tile
                    + (self.k - 1) * c_pad * t * in_bytes  # g scratch
                    + 2 * self.out_channels * t * 4        # double-buffered out tile
                    + 5 * c_pad * self.out_channels * in_bytes)  # weights

        while te > 128 and vmem_use(te) > self._VMEM_BUDGET:
            te -= 128
        # v7x has 2 TensorCores: keep >= 2 grid tiles so neither core idles.
        while te > 128 and B * pl.cdiv(E, te) < 2:
            te = _round_up(te // 2, 128)
        return te

    # ------------------------------ forward -------------------------------- #

    def __call__(self, x, meshes):
        # x: (B, C_in, E, 1), matching the PyTorch module's input
        x2 = x[..., 0]                                              # (B, C, E)
        B, C, E = x2.shape
        cdt = self.compute_dtype
        in_bytes = jnp.dtype(cdt).itemsize
        sublane = 8 if in_bytes == 4 else 32 // in_bytes            # 8 f32 / 16 bf16
        c_pad = _round_up(C, sublane)
        te = self._pick_te(c_pad, E, B, in_bytes)
        e_pad = _round_up(E, te)

        f = self.gather_ring(x2, meshes, e_pad)                     # (B,5,C,Ep) f32
        if c_pad > C:
            f = jnp.pad(f, ((0, 0), (0, 0), (0, c_pad - C), (0, 0)))
        f = f.astype(cdt)                                           # halve HBM bytes

        # weight (O, C, 1, K) -> (O, K, C_pad); tap-k block k matches the kernel's
        # [g0 | g1 | g2 | g3 | g4] ordering (verified by reference check below).
        wk = jnp.transpose(self.weight[:, :, 0, :], (0, 2, 1))      # (O, K, C)
        if c_pad > C:
            wk = jnp.pad(wk, ((0, 0), (0, 0), (0, c_pad - C)))
        w0 = wk[:, 0, :].astype(cdt)                                # (O, C_pad)
        wr = jnp.reshape(wk[:, 1:, :],
                         (self.out_channels, (self.k - 1) * c_pad)).astype(cdt)
        b2 = self.bias[:, None].astype(jnp.float32)                 # (O, 1)

        out = mesh_conv_pallas(f, w0, wr, b2, te,
                               vmem_limit_bytes=self._VMEM_LIMIT)   # (B,O,Ep) f32
        # padded edge columns (E..e_pad) hold bias-only garbage; slice them off.
        out_nchw = out[:, :, :E][..., None]                         # (B,O,E,1)

        # update_meshes: m.x = out[b].squeeze(-1).permute(1, 0) -> (E, Cout)
        upd = []
        for i, m in enumerate(meshes):
            m.x = jnp.transpose(out_nchw[i, :, :, 0], (1, 0))
            upd.append(m)
        return out_nchw, upd


# ------------------------- pure-JAX reference check ------------------------- #

def reference_forward(module, x, meshes):
    x2 = x[..., 0]
    B, C, E = x2.shape
    f = module.gather_ring(x2, meshes, E)              # (B, 5, C, E) f32
    fT = jnp.transpose(f, (0, 2, 3, 1))                # (B, C, E, 5)  torch order
    g = jnp.stack(
        [fT[..., 0],
         fT[..., 1] + fT[..., 3],
         fT[..., 2] + fT[..., 4],
         jnp.abs(fT[..., 1] - fT[..., 3]),
         jnp.abs(fT[..., 2] - fT[..., 4])], axis=3)    # (B, C, E, 5)
    w = module.weight[:, :, 0, :]                      # (O, C, 5)
    out = jnp.einsum('bcek,ock->boe', g, w) + module.bias[None, :, None]
    return out[..., None]                              # (B, O, E, 1)


# ---------------------------------- main ------------------------------------ #

if __name__ == "__main__":
    B, C_in, C_out, E, K = 2, 4, 8, 16, 5
    key = jax.random.PRNGKey(0)
    kx, kg0, kg1, kmod = jax.random.split(key, 4)

    # edge features, (B, C_in, E, 1) like the PyTorch module expects
    x = jax.random.normal(kx, (B, C_in, E, 1), jnp.float32)

    # synthetic meshes: random 1-ring neighbor indices in [-1, edges_count)
    edge_counts = [12, 16]
    meshes = []
    for ec, gk in zip(edge_counts, [kg0, kg1]):
        gemm = jax.random.randint(gk, (ec, 4), -1, ec, dtype=jnp.int32)
        meshes.append(Mesh(np.asarray(gemm), ec))

    # --- f32 compute path: tight check against the pure-JAX reference -------- #
    mod_f32 = MeshConvPallas(C_in, C_out, k=K, bias=True, key=kmod,
                             compute_dtype=jnp.float32)
    out_f32, _ = mod_f32(x, meshes)
    out_f32 = jax.block_until_ready(out_f32)
    ref = jax.block_until_ready(reference_forward(mod_f32, x, meshes))
    np.testing.assert_allclose(np.asarray(out_f32), np.asarray(ref),
                               rtol=1e-5, atol=1e-5)

    # --- bf16 compute path (default; halves HBM traffic), looser tolerance --- #
    mod_bf16 = MeshConvPallas(C_in, C_out, k=K, bias=True, key=kmod,
                              compute_dtype=jnp.bfloat16)
    out_bf16, upd_meshes = mod_bf16(x, meshes)
    out_bf16 = jax.block_until_ready(out_bf16)
    np.testing.assert_allclose(np.asarray(out_bf16), np.asarray(ref),
                               rtol=3e-2, atol=3e-2)

    assert out_bf16.shape == (B, C_out, E, 1)
    assert upd_meshes[0].x.shape == (E, C_out)

    print("KERNEL_OK")
</pallas_src>

<mosaic_0001>
module attributes {stable_mosaic.version = 11 : i64} {
  func.func @_mesh_conv_kernel(%arg0: i32, %arg1: i32, %arg2: memref<1x5x8x128xf32, #tpu.memory_space<vmem>>, %arg3: memref<8x8xf32, #tpu.memory_space<vmem>>, %arg4: memref<8x32xf32, #tpu.memory_space<vmem>>, %arg5: memref<8x1xf32, #tpu.memory_space<vmem>>, %arg6: memref<1x8x128xf32, #tpu.memory_space<vmem>>, %arg7: memref<32x128xf32, #tpu.memory_space<vmem>>) attributes {dimension_semantics = [#tpu.dimension_semantics<parallel>, #tpu.dimension_semantics<parallel>], iteration_bounds = array<i64: 2, 1>, scalar_prefetch = 0 : i64, scratch_operands = 1 : i64, tpu.core_type = #tpu.core_type<tc>, window_params = [{transform_indices = @transform_0, window_bounds = array<i64: 1, 5, 8, 128>}, {pipeline_mode = #tpu.pipeline_mode<synchronous>, transform_indices = @transform_1, window_bounds = array<i64: 8, 8>}, {pipeline_mode = #tpu.pipeline_mode<synchronous>, transform_indices = @transform_2, window_bounds = array<i64: 8, 32>}, {pipeline_mode = #tpu.pipeline_mode<synchronous>, transform_indices = @transform_3, window_bounds = array<i64: 8, 1>}, {transform_indices = @transform_4, window_bounds = array<i64: 1, 8, 128>}]} {
    %c0 = arith.constant 0 : index
    %c1 = arith.constant 1 : index
    %c0_0 = arith.constant 0 : index
    %c0_1 = arith.constant 0 : index
    %0 = vector.load %arg2[%c0, %c1, %c0_0, %c0_1] : memref<1x5x8x128xf32, #tpu.memory_space<vmem>>, vector<1x1x8x128xf32>
    %1 = vector.shape_cast %0 : vector<1x1x8x128xf32> to vector<8x128xf32>
    %c0_2 = arith.constant 0 : index
    %c3 = arith.constant 3 : index
    %c0_3 = arith.constant 0 : index
    %c0_4 = arith.constant 0 : index
    %2 = vector.load %arg2[%c0_2, %c3, %c0_3, %c0_4] : memref<1x5x8x128xf32, #tpu.memory_space<vmem>>, vector<1x1x8x128xf32>
    %3 = vector.shape_cast %2 : vector<1x1x8x128xf32> to vector<8x128xf32>
    %4 = arith.addf %1, %3 : vector<8x128xf32>
    %c0_5 = arith.constant 0 : index
    %c0_6 = arith.constant 0 : index
    %5 = vector.load %arg7[%c0_5, %c0_6] : memref<32x128xf32, #tpu.memory_space<vmem>>, vector<8x128xf32>
    tpu.vector_store %arg7[%c0_5, %c0_6], %4 {strides = array<i32>} : memref<32x128xf32, #tpu.memory_space<vmem>>, vector<8x128xf32>,
    %6 = arith.subf %1, %3 : vector<8x128xf32>
    %7 = math.absf %6 : vector<8x128xf32>
    %c16 = arith.constant 16 : index
    %c0_7 = arith.constant 0 : index
    %8 = vector.load %arg7[%c16, %c0_7] : memref<32x128xf32, #tpu.memory_space<vmem>>, vector<8x128xf32>
    tpu.vector_store %arg7[%c16, %c0_7], %7 {strides = array<i32>} : memref<32x128xf32, #tpu.memory_space<vmem>>, vector<8x128xf32>,
    %c0_8 = arith.constant 0 : index
    %c2 = arith.constant 2 : index
    %c0_9 = arith.constant 0 : index
    %c0_10 = arith.constant 0 : index
    %9 = vector.load %arg2[%c0_8, %c2, %c0_9, %c0_10] : memref<1x5x8x128xf32, #tpu.memory_space<vmem>>, vector<1x1x8x128xf32>
    %10 = vector.shape_cast %9 : vector<1x1x8x128xf32> to vector<8x128xf32>
    %c0_11 = arith.constant 0 : index
    %c4 = arith.constant 4 : index
    %c0_12 = arith.constant 0 : index
    %c0_13 = arith.constant 0 : index
    %11 = vector.load %arg2[%c0_11, %c4, %c0_12, %c0_13] : memref<1x5x8x128xf32, #tpu.memory_space<vmem>>, vector<1x1x8x128xf32>
    %12 = vector.shape_cast %11 : vector<1x1x8x128xf32> to vector<8x128xf32>
    %13 = arith.addf %10, %12 : vector<8x128xf32>
    %c8 = arith.constant 8 : index
    %c0_14 = arith.constant 0 : index
    %14 = vector.load %arg7[%c8, %c0_14] : memref<32x128xf32, #tpu.memory_space<vmem>>, vector<8x128xf32>
    tpu.vector_store %arg7[%c8, %c0_14], %13 {strides = array<i32>} : memref<32x128xf32, #tpu.memory_space<vmem>>, vector<8x128xf32>,
    %15 = arith.subf %10, %12 : vector<8x128xf32>
    %16 = math.absf %15 : vector<8x128xf32>
    %c24 = arith.constant 24 : index
    %c0_15 = arith.constant 0 : index
    %17 = vector.load %arg7[%c24, %c0_15] : memref<32x128xf32, #tpu.memory_space<vmem>>, vector<8x128xf32>
    tpu.vector_store %arg7[%c24, %c0_15], %16 {strides = array<i32>} : memref<32x128xf32, #tpu.memory_space<vmem>>, vector<8x128xf32>,
    %c0_16 = arith.constant 0 : index
    %c0_17 = arith.constant 0 : index
    %18 = vector.load %arg3[%c0_16, %c0_17] : memref<8x8xf32, #tpu.memory_space<vmem>>, vector<8x8xf32>
    %c0_18 = arith.constant 0 : index
    %c0_19 = arith.constant 0 : index
    %c0_20 = arith.constant 0 : index
    %c0_21 = arith.constant 0 : index
    %19 = vector.load %arg2[%c0_18, %c0_19, %c0_20, %c0_21] : memref<1x5x8x128xf32, #tpu.memory_space<vmem>>, vector<1x1x8x128xf32>
    %20 = vector.shape_cast %19 : vector<1x1x8x128xf32> to vector<8x128xf32>
    %cst = arith.constant dense<0.000000e+00> : vector<8x128xf32>
    %21 = tpu.matmul %18, %20, %cst {dimension_numbers = #tpu.dot_dimension_numbers<[1], [0], [0], [1], [0, 0, 1, 1], [], []>} : vector<8x8xf32>, vector<8x128xf32>, vector<8x128xf32> -> vector<8x128xf32>
    %c0_22 = arith.constant 0 : index
    %c0_23 = arith.constant 0 : index
    %22 = vector.load %arg4[%c0_22, %c0_23] : memref<8x32xf32, #tpu.memory_space<vmem>>, vector<8x32xf32>
    %c0_24 = arith.constant 0 : index
    %c0_25 = arith.constant 0 : index
    %23 = vector.load %arg7[%c0_24, %c0_25] : memref<32x128xf32, #tpu.memory_space<vmem>>, vector<32x128xf32>
    %cst_26 = arith.constant dense<0.000000e+00> : vector<8x128xf32>
    %24 = tpu.matmul %22, %23, %cst_26 {dimension_numbers = #tpu.dot_dimension_numbers<[1], [0], [0], [1], [0, 0, 1, 1], [], []>} : vector<8x32xf32>, vector<32x128xf32>, vector<8x128xf32> -> vector<8x128xf32>
    %25 = arith.addf %21, %24 : vector<8x128xf32>
    %c0_27 = arith.constant 0 : index
    %c0_28 = arith.constant 0 : index
    %26 = vector.load %arg5[%c0_27, %c0_28] : memref<8x1xf32, #tpu.memory_space<vmem>>, vector<8x1xf32>
    %27 = vector.broadcast %26 : vector<8x1xf32> to vector<8x128xf32>
    %28 = arith.addf %25, %27 : vector<8x128xf32>
    %c0_29 = arith.constant 0 : index
    %c0_30 = arith.constant 0 : index
    %c0_31 = arith.constant 0 : index
    %29 = vector.load %arg6[%c0_29, %c0_30, %c0_31] : memref<1x8x128xf32, #tpu.memory_space<vmem>>, vector<1x8x128xf32>
    %30 = vector.shape_cast %29 : vector<1x8x128xf32> to vector<8x128xf32>
    %31 = vector.shape_cast %28 : vector<8x128xf32> to vector<1x8x128xf32>
    tpu.vector_store %arg6[%c0_29, %c0_30, %c0_31], %31 {strides = array<i32>} : memref<1x8x128xf32, #tpu.memory_space<vmem>>, vector<1x8x128xf32>,
    return
  }
  func.func @transform_0(%arg0: i32, %arg1: i32) -> (i32, i32, i32, i32) {
    %c0_i32 = arith.constant 0 : i32
    %c0_i32_0 = arith.constant 0 : i32
    %c0_i32_1 = arith.constant 0 : i32
    return %arg0, %c0_i32, %c0_i32_0, %arg1 : i32, i32, i32, i32
  }
  func.func @transform_1(%arg0: i32, %arg1: i32) -> (i32, i32) {
    %c0_i32 = arith.constant 0 : i32
    %c0_i32_0 = arith.constant 0 : i32
    %c0_i32_1 = arith.constant 0 : i32
    return %c0_i32, %c0_i32_0 : i32, i32
  }
  func.func @transform_2(%arg0: i32, %arg1: i32) -> (i32, i32) {
    %c0_i32 = arith.constant 0 : i32
    %c0_i32_0 = arith.constant 0 : i32
    %c0_i32_1 = arith.constant 0 : i32
    return %c0_i32, %c0_i32_0 : i32, i32
  }
  func.func @transform_3(%arg0: i32, %arg1: i32) -> (i32, i32) {
    %c0_i32 = arith.constant 0 : i32
    %c0_i32_0 = arith.constant 0 : i32
    %c0_i32_1 = arith.constant 0 : i32
    return %c0_i32, %c0_i32_0 : i32, i32
  }
  func.func @transform_4(%arg0: i32, %arg1: i32) -> (i32, i32, i32) {
    %c0_i32 = arith.constant 0 : i32
    %c0_i32_0 = arith.constant 0 : i32
    return %arg0, %c0_i32, %arg1 : i32, i32, i32
  }
}

</mosaic_0001>

<bundles_post_ra>
// kernel: tpu_custom_call.1
= control target key start
LH: loop header
LB: loop body
LE: loop exit
PB: predicated region body
PF: predicated region fallthrough
CT: control target
= control target key end

     0   :  { %s873_s0 = inlined_call_operand.hbm [shape: f32[2,5,8,128], index: 0, kind: input, shape index: {}]   ;;  %s874_s1 = inlined_call_operand.vmem [shape: f32[8,8], index: 1, kind: input, shape index: {}]   ;;  %s875_s2 = inlined_call_operand.hbm [shape: f32[8,32], index: 2, kind: input, shape index: {}]   ;;  %s876_s3 = inlined_call_operand.vmem [shape: f32[8,1], index: 3, kind: input, shape index: {}]   ;;  %s877_s4 = inlined_call_operand.hbm [shape: f32[2,8,128], index: 4, kind: output, shape index: {}]  }
   0x1   :  { %880 = sst [smem:[#allocation13_spill]] %s875_s2 }
   0x2   :  { %9 = vsyncpa [#allocation4], 0 }
   0x3   :  { %11 = vsyncpa [#allocation4 + $0x1], 0 }
   0x4   :  { %12 = vsyncpa [#allocation7], 0 }
   0x5   :  { %13 = vsyncpa [#allocation5], 0 }
   0x6   :  { %15 = vsyncpa [#allocation5 + $0x1], 0  ;;  %s715_s15 = smov 0   ;;  %s717_s16 = smov 0  }
   0x7   :  { %s719_s17 = smov 0   ;;  %s721_s18 = smov 0  }
   0x8   :  { %s723_s19 = smov 0   ;;  %s725_s20 = smov 0  }
   0x9 LB: > { %881 = sst [smem:[#allocation12_spill]] %s684_s20  ;;  %s439_s21 = sadd.s32 4294967295, %s684_s20   ;;  %s684_s20 = sphi %s725_s20, %s21_s20   ;;  %s680_s19 = sphi %s723_s19, %s895_s19   ;;  %s676_s18 = sphi %s721_s18, %s894_s18   ;;  %s672_s17 = sphi %s719_s17, %s893_s17   ;;  %s668_s16 = sphi %s717_s16, %s892_s16   ;;  %s664_s15 = sphi %s715_s15, %s891_s15  }
   0xa   : > { %s440_s22 = sadd.s32 4294967294, %s684_s20   ;;  %s42_s23 = sadd.s32 1, %s672_s17 }
   0xb   : > { %p49_p0 = scmp.ne.s32.totalorder %s672_s17, %s668_s16  ;;  %p50_p1 = scmp.eq.s32.totalorder %s684_s20, 0 }
   0xc   : > { %p55_p2 = scmp.ne.s32.totalorder %s668_s16, %s664_s15  ;;  %p753_p3 = scmp.eq.s32.totalorder %s439_s21, 0 }
   0xd   : > { %p144_p4 = scmp.eq.s32.totalorder %s439_s21, 1  ;;  %p757_p5 = por %p50_p1, %p49_p0 }
   0xe   : > { %p150_p6 = scmp.eq.s32.totalorder %s440_s22, 1  ;;  %p763_p7 = por %p753_p3, %p55_p2 }
   0xf   : > { %p767_p8 = por %p144_p4, %p49_p0  ;;  %p441_p10 = scmp.ge.s32.totalorder %s684_s20, 1 }
  0x10   : > { %p771_p9 = por %p150_p6, %p55_p2  ;;  %p157_p11 = scmp.lt.s32.totalorder %s684_s20, 3 }
  0x11   : > { %s887_s2 = sld [smem:[#allocation13_spill]]  ;;  %s686_s7 = smov [#allocation6]  }
  0x12   : > { %p780_p12 = pnand %p441_p10, %p157_p11  ;;  %s174_s8 = sshll.u32 %s686_s7, 4  ;;  %s175_s8 = int_to_ptr.vmem [resolvable:$true] %s174_s8 }
  0x13   : > { %p443_p13 = scmp.ge.s32.totalorder %s684_s20, 2  ;;  %p482_p1 = scmp.lt.s32.totalorder %s684_s20, 2 }
  0x14   : > { %p469_p0 = pneg %p780_p12  ;;  %s33_s10 = sadd.s32 1, %s680_s19 }
  0x15   : > { %p792_p4 = pnand %p482_p1, %p757_p5  ;;  %p35_p6 = scmp.ge.s32.totalorder %s33_s10, 2 }
  0x16   : > { %p470_p2 = pnand %p469_p0, %p753_p3  ;;  %s188_s11 = sand.u32 1, %s672_s17  }
  0x17   : > { %s172_s5 = sshll.u32 %s887_s2, 4  ;;  %s897_s10 = smov (%p35_p6, %s33_s10), 0  ;;  %s173_s5 = int_to_ptr.hbm [resolvable:$true] %s172_s5 }
  0x18   : > { %472 = dma.hbm_to_vmem [thread:$0]  (!%p470_p2), %s173_s5, 128, %s175_s8, [#allocation7]  }
  0x19   : > { %s458_s12 = smul.u32 40, %s188_s11  ;;  %s37_s13 = ssub.s32 %s680_s19, %s897_s10 }
  0x1a   : > { %s459_s14 = smul.u32 40, %s680_s19  ;;  %p40_p10 = scmp.eq.s32.totalorder %s37_s13, 0 }
  0x1b   : > { %s192_s29 = scalar_lea.vmem [#allocation3], %s458_s12  ;;  %s189_s5 = scalar_lea.sflag [#allocation4], %s188_s11 }
  0x1c   : > { %s198_s25 = scalar_lea.hbm %s873_s0, %s459_s14  ;;  %s201_s30 = sshll.u32 %s192_s29, 4  ;;  %s202_s30 = int_to_ptr.vmem [resolvable:$true] %s201_s30 }
  0x1d   : > { %s809_s7 = scalar_select %p40_p10, %s672_s17, %s42_s23  }
  0x1e   : > { %s199_s2 = sshll.u32 %s198_s25, 4  ;;  %s687_s8 = smov 128   ;;  %s200_s2 = int_to_ptr.hbm [resolvable:$true] %s199_s2 }
  0x1f   : > { %s688_s20 = smov 8   ;;  %213 = sbr.rel (%p780_p12) target bundleno = 185 (0xb9), region = 36 }
  0x20   : > { %476 = dma.hbm_to_vmem [thread:$0]  (!%p792_p4), %s200_s2, 640, %s202_s30, %s189_s5, %s687_s8, %s687_s8, %s688_s20  }
  0x21   : > { %s816_s13 = sand.u32 (!%p780_p12), 1, %s668_s16  }
  0x22   : > { %s460_s12 = smul.u32 (!%p780_p12), 40, %s816_s13  ;;  %s216_s23 = scalar_lea.sflag (!%p780_p12), [#allocation4], %s816_s13 }
  0x24   : > { %s219_s14 = scalar_lea.vmem [#allocation3], %s460_s12 }
  0x25   : > { %651 = dma.done.wait (%p763_p7), %s216_s23, 640  }
  0x26   : > { %653 = vsyncadd (%p763_p7), %s216_s23, 4294966656 }
  0x27   : > { %655 = dma.done.wait (%p753_p3), [#allocation7], 128  }
  0x28   : > { %657 = vsyncadd (%p753_p3), [#allocation7], 4294967168  ;;  %v689_v0 = vmov 0   ;;  %v450_v1 = vld [vmem:[%s219_s14 + $0x10] sm:$0xff]  ;;  %v451_v2 = vld [vmem:[%s219_s14 + $0x20] sm:$0xff]  ;;  %vm299_vm0 = vcmask 64512  }
  0x29   : > { %537 = vset.pattern.permute.xlu0 %v689_v0  ;;  %v448_v3 = vld [vmem:[%s219_s14 + $0x8] sm:$0xff]  ;;  %v265_v4 = vsub.f32 %v450_v1, %v451_v2  ;;  %v449_v5 = vld [vmem:[%s219_s14 + $0x18] sm:$0xff]  ;;  %v269_v6 = vld [vmem:[%s219_s14] sm:$0xff]  ;;  %v263_v12 = vadd.f32 %v451_v2, %v450_v1  ;;  %vm275_vm1 = vcmask 261120   ;;  %s447_s24 = sshll.u32 %s816_s13, 3  ;;  %s455_s9 = sshll.u32 %s676_s18, 3 }
  0x2a   : > { %v256_v7 = vsub.f32 %v448_v3, %v449_v5  ;;  %318 = vmatpush.msra.mxu1 %v269_v6  ;;  %v268_v8 = vld [vmem:[%s874_s1] sm:$0xff]  ;;  %v254_v13 = vadd.f32 %v449_v5, %v448_v3  ;;  %v270_v14 = vld [vmem:[#allocation6] sm:$0xff]  ;;  %s343_s22 = scalar_lea.hbm %s877_s4, %s455_s9  ;;  %s249_s25 = scalar_lea.vmem [#allocation8], %s447_s24 }
  0x2b   : > { %v323_v9 = vld [vmem:[%s876_s3] sm:$0xff]  ;;  %v266_v10 = vand.u32 2147483647, %v265_v4  ;;  %453 = vmatmul.msk.f32.vlgmr.msra.gmra.mxu1 %vm299_vm0, %v268_v8  ;;  %s345_s29 = sshll.u32 %s249_s25, 4  ;;  %s347_s30 = sshll.u32 %s343_s22, 4  ;;  %s346_s29 = int_to_ptr.vmem [resolvable:$true] %s345_s29  ;;  %s348_s30 = int_to_ptr.hbm [resolvable:$true] %s347_s30 }
  0x2c   : > { %326 = vperm.xlu0 %537, %v323_v9   ;;  %v257_v11 = vand.u32 2147483647, %v256_v7  ;;  %s332_s5 = scalar_lea.sflag [#allocation5], %s816_s13  ;;  %s612_s8 = sshra.s32 %s348_s30, 4  ;;  %s613_s8 = int_to_ptr.hbm [resolvable:$true] %s612_s8 }
  0x2d   : > { %291 = vmatpush.msra.mxu0 %v266_v10  ;;  %s614_s18 = scalar_lea.hbm %s613_s8, 8  ;;  %s618_s14 = scalar_lea.hbm %s877_s4, 16 }
  0x2e   : > { %p615_p3 = scmp.ne.s32.totalorder %s613_s8, %s614_s18  ;;  %p619_p11 = scmp.lt.s32.totalorder %s613_s8, %s877_s4 }
  0x2f   : > { %292 = vmatpush.msra.mxu0 %v257_v11  ;;  %p620_p12 = scmp.lt.s32.totalorder %s618_s14, %s614_s18 }
  0x30   : > { %p616_p5 = pnand %p615_p3, %p767_p8 }
  0x31   : > { %293 = vmatpush.msra.mxu0 %v263_v12  ;;  %p621_p0 = por %p620_p12, %p619_p11 }
  0x32   : > { %p617_p7 = pneg %p616_p5 }
  0x33   : > { %294 = vmatpush.msra.mxu0 %v254_v13 }
  0x34   : > { %452 = vmatmul.msk.f32.vlgmr.msra.gmra.mxu0 %vm275_vm1, %v270_v14  ;;  %p622_p1 = pnand %p621_p0, %p617_p7 }
  0x9e   : > { %v327_v17 = vpop.permute.xlu0 %326 }
  0xa8   : > { %v320_v15 = vpop.f32.mrf.mxu1 }
  0xb1   : > { %v296_v16 = vpop.f32.mrf.mxu0 }
  0xb2   : > { %v321_v18 = vadd.f32 %v320_v15, %v296_v16 }
  0xb4   : > { %v329_v19 = vadd.f32 %v327_v17, %v321_v18 }
  0xb6   : > { %330 = vst [vmem:[%s249_s25] sm:$0xff] %v329_v19 }
  0xb7   : > { %625 = shalt.err (!%p622_p1)
}
  0xb8   : > { %467 = dma.vmem_to_hbm [thread:$0]  (%p767_p8), %s346_s29, 128, %s348_s30, %s332_s5  }
  0xb9 PF: > { %s890_s13 = sld [smem:[#allocation12_spill]]  ;;  %s359_s26 = sand.u32 1, %s664_s15  }
  0xba   : > { %p478_p2 = pnand %p443_p13, %p771_p9  ;;  %s360_s6 = scalar_lea.sflag [#allocation5], %s359_s26 }
  0xbc   : > { %p479_p4 = pneg %p478_p2 }
  0xbe   : > { %659 = dma.done.wait (%p479_p4), %s360_s6, 128  }
  0xbf   : > { %661 = vsyncadd (%p479_p4), %s360_s6, 4294967168  ;;  %s21_s20 = sadd.s32 1, %s890_s13   ;;  %s891_s15 = smov %s668_s16 }
  0xc0   : > { %p18_p6 = scmp.ge.s32.totalorder %s21_s20, 4   ;;  %s892_s16 = smov %s672_s17 }
  0xc1   : > { %s893_s17 = smov %s809_s7  ;;  %s894_s18 = smov %s680_s19 }
  0xc2   : > { %s895_s19 = smov %s897_s10  ;;  %20 = sbr.rel (!%p18_p6) target bundleno = 9 (0x9), region = 89 }
  0xc7   :  { %366 = vsyncpa [#allocation4], 1 }
  0xc8   :  { %368 = vsyncpa [#allocation4 + $0x1], 1 }
  0xc9   :  { %369 = vsyncpa [#allocation7], 1 }
  0xca   :  { %370 = vsyncpa [#allocation5], 1 }
  0xcb   :  { %372 = vsyncpa [#allocation5 + $0x1], 1 }

</bundles_post_ra>
